<compile_context>
chip_gen: v7x
topology: tpu7x:2x2x1
jax: 0.10.0
libtpu: 0.0.40
codegen_flags: <defaults>
</compile_context>

<pallas_src>
import jax
import jax.numpy as jnp
from jax import lax
from jax.experimental import pallas as pl
from jax.experimental.pallas import tpu as pltpu

_LANES = 128


def _make_kernel(C, Cr, HW, THW, n_hw_tiles, block_chunks, max_dtype):
    inv_hw = 1.0 / float(HW)
    ragged = (HW % THW) != 0
    valid_last = HW - (n_hw_tiles - 1) * THW        # real lanes in the last HW tile (static)
    blk_lanes = block_chunks * _LANES
    carry_in_regs = C <= 128                        # (C,128) partials fit comfortably in vregs

    def kernel(x_ref, w1t_ref, w2t_ref, o_ref, sum_acc, max_acc):
        # x_ref   : (1, C, THW)   one HW tile of one image
        # w1t_ref : (C, Cr)       fc1 weight, pre-transposed in the wrapper (f32)
        # w2t_ref : (Cr, C)       fc2 weight, pre-transposed in the wrapper (f32)
        # o_ref   : (1, 1, C)     sigmoid(fc2(relu(fc1(avg)) + relu(fc1(max))))
        # sum_acc : (C, 128) f32  running sum partials (lane-parallel)
        # max_acc : (C, 128)      running max partials, kept in the input dtype
        j = pl.program_id(1)

        @pl.when(j == 0)
        def _init():
            sum_acc[...] = jnp.zeros((C, _LANES), jnp.float32)
            max_acc[...] = jnp.full((C, _LANES), -jnp.inf, max_dtype)

        def reduce_chunks(base, count):
            # Register-resident partials over `count` consecutive 128-lane chunks
            # starting at (128-aligned) lane offset `base` of the current tile.
            start0 = pl.multiple_of(base, _LANES)
            c0 = x_ref[0, :, pl.ds(start0, _LANES)]
            s = c0.astype(jnp.float32)
            m = c0.astype(max_dtype)
            for k in range(1, count):
                start_k = pl.multiple_of(base + k * _LANES, _LANES)
                c = x_ref[0, :, pl.ds(start_k, _LANES)]
                s = s + c.astype(jnp.float32)
                m = jnp.maximum(m, c.astype(max_dtype))
            return s, m

        def accum_tile(valid_lanes):
            # Accumulate the first `valid_lanes` lanes of the current tile.
            n_chunks = valid_lanes // _LANES
            rem = valid_lanes - n_chunks * _LANES
            nblk = n_chunks // block_chunks
            tail = n_chunks - nblk * block_chunks

            if carry_in_regs:
                # Carry the (C,128) partials through the rolled loop; one scratch
                # RMW per grid step.
                s_tot = jnp.zeros((C, _LANES), jnp.float32)
                m_tot = jnp.full((C, _LANES), -jnp.inf, max_dtype)
                if nblk > 0:
                    def body(b, carry):
                        s, m = carry
                        bs, bm = reduce_chunks(b * blk_lanes, block_chunks)
                        return s + bs, jnp.maximum(m, bm)
                    s_tot, m_tot = lax.fori_loop(0, nblk, body, (s_tot, m_tot))
                if tail > 0:
                    ts, tm = reduce_chunks(nblk * blk_lanes, tail)
                    s_tot = s_tot + ts
                    m_tot = jnp.maximum(m_tot, tm)
                if n_chunks > 0:
                    sum_acc[...] = sum_acc[...] + s_tot
                    max_acc[...] = jnp.maximum(max_acc[...], m_tot)
            else:
                # Wide-channel path: one scratch RMW per block of chunks.
                if nblk > 0:
                    @pl.loop(0, nblk)
                    def _blocks(b):
                        bs, bm = reduce_chunks(b * blk_lanes, block_chunks)
                        sum_acc[...] = sum_acc[...] + bs
                        max_acc[...] = jnp.maximum(max_acc[...], bm)
                if tail > 0:
                    ts, tm = reduce_chunks(nblk * blk_lanes, tail)
                    sum_acc[...] = sum_acc[...] + ts
                    max_acc[...] = jnp.maximum(max_acc[...], tm)

            if rem > 0:
                # Static partial-lane tail; padded OOB lanes are never read.
                t0 = n_chunks * _LANES
                c = x_ref[0, :, t0:t0 + rem]
                sum_acc[:, :rem] = sum_acc[:, :rem] + c.astype(jnp.float32)
                max_acc[:, :rem] = jnp.maximum(max_acc[:, :rem], c.astype(max_dtype))

        if not ragged:
            accum_tile(THW)
        else:
            @pl.when(j < n_hw_tiles - 1)
            def _steady():
                accum_tile(THW)

            @pl.when(j == n_hw_tiles - 1)
            def _last():
                accum_tile(valid_last)

        @pl.when(j == n_hw_tiles - 1)
        def _finalize():
            # One small transpose + reduce per image -> lane-dense (1, C) pooled rows.
            avg_row = jnp.sum(sum_acc[...].T, axis=0, keepdims=True) * inv_hw          # (1, C)
            max_row = jnp.max(max_acc[...].astype(jnp.float32).T, axis=0,
                              keepdims=True)                                            # (1, C)
            w1t = w1t_ref[...]                                                          # (C, Cr)
            h = (jnp.maximum(jnp.dot(avg_row, w1t,
                                     preferred_element_type=jnp.float32), 0.0)
                 + jnp.maximum(jnp.dot(max_row, w1t,
                                       preferred_element_type=jnp.float32), 0.0))       # (1, Cr)
            y = jnp.dot(h, w2t_ref[...], preferred_element_type=jnp.float32)            # (1, C)
            o_ref[0] = jax.nn.sigmoid(y).astype(o_ref.dtype)

    return kernel


def channel_attention(x, w_fc1, w_fc2, *, x_tile_budget_bytes=None,
                      block_chunks=8, x_buffers=2):
    """SE/CBAM channel attention (ChannelAttention.forward).

    x     : (N, C, H, W)  float32 or bfloat16 (sums accumulate in f32)
    w_fc1 : (C // 16, C)  1x1 conv weight, bias=False
    w_fc2 : (C, C // 16)  1x1 conv weight, bias=False
    returns (N, C, 1, 1) attention weights, same dtype as x.
    """
    N, C, H, W = x.shape
    Cr = w_fc1.shape[0]
    assert Cr >= 1 and w_fc1.shape == (Cr, C) and w_fc2.shape == (C, Cr)
    assert jnp.issubdtype(x.dtype, jnp.floating), "ChannelAttention expects float feature maps"

    HW = H * W
    x3 = x.reshape(N, C, HW)
    itemsize = jnp.dtype(x.dtype).itemsize

    # Physical VMEM with headroom for Mosaic internal scratch, weights, accumulators.
    try:
        info = pltpu.get_tpu_info()
        vmem_cap = int(getattr(info, "vmem_capacity_bytes", 64 << 20))
    except Exception:  # pragma: no cover - conservative fallback
        vmem_cap = 64 << 20
    headroom = 12 << 20

    if x_tile_budget_bytes is None:
        # 8 MiB / buffer on 64-MiB parts (v7x), 24 MiB on 128-MiB parts (v5e/v6e).
        x_tile_budget_bytes = (8 << 20) if vmem_cap <= (64 << 20) else (24 << 20)
    n_bufs = max(int(x_buffers), 2)
    x_tile_budget_bytes = max(
        C * _LANES * itemsize,
        min(int(x_tile_budget_bytes), (vmem_cap - headroom - (4 << 20)) // n_bufs))

    # Largest lane-aligned HW tile fitting the per-buffer budget (loop is rolled,
    # so no cap on tile size beyond the VMEM budget).
    max_lanes = max(_LANES, ((x_tile_budget_bytes // (C * itemsize)) // _LANES) * _LANES)
    THW = HW if HW <= max_lanes else max_lanes
    n_hw = pl.cdiv(HW, THW)
    assert n_hw == 1 or THW % _LANES == 0, "multi-tile runs must use 128-aligned HW tiles"

    # Transpose the tiny 1x1-conv weights once so the in-kernel MLP is lane-dense.
    w1t = jnp.transpose(w_fc1).astype(jnp.float32)   # (C, Cr)
    w2t = jnp.transpose(w_fc2).astype(jnp.float32)   # (Cr, C)

    kernel = _make_kernel(C=C, Cr=Cr, HW=HW, THW=THW, n_hw_tiles=n_hw,
                          block_chunks=int(block_chunks), max_dtype=x.dtype)

    x_buf_bytes = C * THW * itemsize
    vmem_limit = int(min(vmem_cap - headroom,
                         max(32 << 20, n_bufs * x_buf_bytes + (8 << 20))))
    vmem_limit = max(vmem_limit, 16 << 20)

    cost = pl.CostEstimate(
        flops=2 * N * C * HW + 4 * N * C * Cr,
        transcendentals=N * C,
        bytes_accessed=N * C * HW * itemsize + 2 * C * Cr * 4 + N * C * itemsize,
    )

    x_spec_kwargs = {}
    if int(x_buffers) != 2:
        x_spec_kwargs["pipeline_mode"] = pl.Buffered(int(x_buffers))
    x_spec = pl.BlockSpec((1, C, THW), lambda n, j: (n, 0, j), **x_spec_kwargs)

    out = pl.pallas_call(
        kernel,
        out_shape=jax.ShapeDtypeStruct((N, 1, C), x.dtype),
        grid_spec=pltpu.PrefetchScalarGridSpec(
            num_scalar_prefetch=0,
            grid=(N, n_hw),
            in_specs=[
                x_spec,
                pl.BlockSpec((C, Cr), lambda n, j: (0, 0)),
                pl.BlockSpec((Cr, C), lambda n, j: (0, 0)),
            ],
            out_specs=pl.BlockSpec((1, 1, C), lambda n, j: (n, 0, 0)),
            scratch_shapes=[
                pltpu.VMEM((C, _LANES), jnp.float32),   # running sum partials (f32)
                pltpu.VMEM((C, _LANES), x.dtype),       # running max partials (input dtype)
            ],
        ),
        compiler_params=pltpu.CompilerParams(
            dimension_semantics=("parallel", "arbitrary"),
            vmem_limit_bytes=vmem_limit,
        ),
        cost_estimate=cost,
    )(x3, w1t, w2t)

    return out.reshape(N, C, 1, 1)


def _reference(x, w_fc1, w_fc2):
    # Pure-JAX reference of the PyTorch ChannelAttention forward.
    x = x.astype(jnp.float32)
    avg = jnp.mean(x, axis=(2, 3))                          # (N, C)
    mx = jnp.max(x, axis=(2, 3))                            # (N, C)

    def mlp(v):                                             # 1x1 convs on (N,C,1,1) == matmuls
        h = jnp.maximum(v @ w_fc1.T, 0.0)
        return h @ w_fc2.T

    out = jax.nn.sigmoid(mlp(avg) + mlp(mx))                # (N, C)
    return out[:, :, None, None]


if __name__ == "__main__":
    key = jax.random.PRNGKey(0)
    kx, k1, k2, kx2, kx3, kx4, k3, k4 = jax.random.split(key, 8)

    # FasterRCNN uses ChannelAttention(in_planes=64, ratio=16) -> fc1: 64->4, fc2: 4->64.
    N, C, H, W = 2, 64, 16, 16
    Cr = C // 16

    x = jax.random.normal(kx, (N, C, H, W), dtype=jnp.float32)
    w_fc1 = jax.random.normal(k1, (Cr, C), dtype=jnp.float32) * 0.1
    w_fc2 = jax.random.normal(k2, (C, Cr), dtype=jnp.float32) * 0.1
    ref = _reference(x, w_fc1, w_fc2)

    # 1) Single-tile path (whole HW fits one lane tile; static tail chunks only).
    out = jax.block_until_ready(channel_attention(x, w_fc1, w_fc2))
    assert out.shape == (N, C, 1, 1), out.shape
    assert jnp.allclose(out, ref, atol=1e-4, rtol=1e-4), "single-tile mismatch"

    # 2) Multi-tile accumulation path (force THW=128 -> 2 HW tiles per image).
    out2 = jax.block_until_ready(
        channel_attention(x, w_fc1, w_fc2, x_tile_budget_bytes=32 * 1024))
    assert jnp.allclose(out2, ref, atol=1e-4, rtol=1e-4), "multi-tile mismatch"

    # 3) Ragged last HW tile (HW=300, THW=128 -> static 44-lane tail on the last tile).
    x3a = jax.random.normal(kx2, (N, C, 15, 20), dtype=jnp.float32)
    ref3 = _reference(x3a, w_fc1, w_fc2)
    out3 = jax.block_until_ready(
        channel_attention(x3a, w_fc1, w_fc2, x_tile_budget_bytes=32 * 1024))
    assert jnp.allclose(out3, ref3, atol=1e-4, rtol=1e-4), "ragged-tile mismatch"

    # 4) Larger HW exercising the rolled fori_loop block loop (HW=2304 -> 18 chunks).
    x4 = jax.random.normal(kx3, (N, C, 48, 48), dtype=jnp.float32)
    ref4 = _reference(x4, w_fc1, w_fc2)
    out4 = jax.block_until_ready(channel_attention(x4, w_fc1, w_fc2))
    assert jnp.allclose(out4, ref4, atol=1e-4, rtol=1e-4), "fori-loop path mismatch"

    # 5) bf16 inputs: max accumulator stays bf16, sums in f32.
    xb = x4.astype(jnp.bfloat16)
    refb = _reference(xb, w_fc1, w_fc2)
    outb = jax.block_until_ready(channel_attention(xb, w_fc1, w_fc2))
    assert outb.dtype == jnp.bfloat16
    assert jnp.allclose(outb.astype(jnp.float32), refb, atol=2e-2, rtol=2e-2), "bf16 mismatch"

    # 6) Wide-channel path (C > 128 -> per-block scratch RMW) with a ragged chunk tail.
    C2, Cr2 = 256, C2 // 16 if False else 16
    x6 = jax.random.normal(kx4, (1, C2, 40, 40), dtype=jnp.float32)
    w1b = jax.random.normal(k3, (Cr2, C2), dtype=jnp.float32) * 0.05
    w2b = jax.random.normal(k4, (C2, Cr2), dtype=jnp.float32) * 0.05
    ref6 = _reference(x6, w1b, w2b)
    out6 = jax.block_until_ready(channel_attention(x6, w1b, w2b))
    assert jnp.allclose(out6, ref6, atol=1e-4, rtol=1e-4), "wide-channel mismatch"

    print("KERNEL_OK")
</pallas_src>

<mosaic_0001>
module attributes {stable_mosaic.version = 11 : i64} {
  func.func @kernel(%arg0: i32, %arg1: i32, %arg2: memref<1x64x256xf32, #tpu.memory_space<vmem>>, %arg3: memref<64x4xf32, #tpu.memory_space<vmem>>, %arg4: memref<4x64xf32, #tpu.memory_space<vmem>>, %arg5: memref<1x1x64xf32, #tpu.memory_space<vmem>>, %arg6: memref<64x128xf32, #tpu.memory_space<vmem>>, %arg7: memref<64x128xf32, #tpu.memory_space<vmem>>) attributes {dimension_semantics = [#tpu.dimension_semantics<parallel>, #tpu.dimension_semantics<arbitrary>], iteration_bounds = array<i64: 2, 1>, scalar_prefetch = 0 : i64, scratch_operands = 2 : i64, tpu.core_type = #tpu.core_type<tc>, window_params = [{transform_indices = @transform_0, window_bounds = array<i64: 1, 64, 256>}, {pipeline_mode = #tpu.pipeline_mode<synchronous>, transform_indices = @transform_1, window_bounds = array<i64: 64, 4>}, {pipeline_mode = #tpu.pipeline_mode<synchronous>, transform_indices = @transform_2, window_bounds = array<i64: 4, 64>}, {transform_indices = @transform_3, window_bounds = array<i64: 1, 1, 64>}]} {
    %c0_i32 = arith.constant 0 : i32
    %0 = arith.cmpi eq, %arg1, %c0_i32 : i32
    %1 = arith.extui %0 : i1 to i32
    %c0_i32_0 = arith.constant 0 : i32
    %2 = arith.cmpi ne, %1, %c0_i32_0 : i32
    scf.if %2 {
      %cst_16 = arith.constant 0.000000e+00 : f32
      %26 = vector.broadcast %cst_16 : f32 to vector<64x128xf32>
      %c0_17 = arith.constant 0 : index
      %c0_18 = arith.constant 0 : index
      %27 = vector.load %arg6[%c0_17, %c0_18] : memref<64x128xf32, #tpu.memory_space<vmem>>, vector<64x128xf32>
      tpu.vector_store %arg6[%c0_17, %c0_18], %26 {strides = array<i32>} : memref<64x128xf32, #tpu.memory_space<vmem>>, vector<64x128xf32>,
      %cst_19 = arith.constant 0xFF800000 : f32
      %28 = vector.broadcast %cst_19 : f32 to vector<64x128xf32>
      %c0_20 = arith.constant 0 : index
      %c0_21 = arith.constant 0 : index
      %29 = vector.load %arg7[%c0_20, %c0_21] : memref<64x128xf32, #tpu.memory_space<vmem>>, vector<64x128xf32>
      tpu.vector_store %arg7[%c0_20, %c0_21], %28 {strides = array<i32>} : memref<64x128xf32, #tpu.memory_space<vmem>>, vector<64x128xf32>,
    } else {
    }
    %cst = arith.constant 0.000000e+00 : f32
    %3 = vector.broadcast %cst : f32 to vector<64x128xf32>
    %cst_1 = arith.constant 0xFF800000 : f32
    %4 = vector.broadcast %cst_1 : f32 to vector<64x128xf32>
    %c0_i32_2 = arith.constant 0 : i32
    %5 = tpu.assume_multiple %c0_i32_2, 128 : i32
    %c0 = arith.constant 0 : index
    %c0_3 = arith.constant 0 : index
    %6 = arith.index_cast %5 : i32 to index
    %7 = vector.load %arg2[%c0, %c0_3, %6] : memref<1x64x256xf32, #tpu.memory_space<vmem>>, vector<1x64x128xf32>
    %8 = vector.shape_cast %7 : vector<1x64x128xf32> to vector<64x128xf32>
    %c128_i32 = arith.constant 128 : i32
    %9 = tpu.assume_multiple %c128_i32, 128 : i32
    %c0_4 = arith.constant 0 : index
    %c0_5 = arith.constant 0 : index
    %10 = arith.index_cast %9 : i32 to index
    %11 = vector.load %arg2[%c0_4, %c0_5, %10] : memref<1x64x256xf32, #tpu.memory_space<vmem>>, vector<1x64x128xf32>
    %12 = vector.shape_cast %11 : vector<1x64x128xf32> to vector<64x128xf32>
    %13 = arith.addf %8, %12 : vector<64x128xf32>
    %14 = arith.maximumf %8, %12 : vector<64x128xf32>
    %15 = arith.addf %3, %13 : vector<64x128xf32>
    %16 = arith.maximumf %4, %14 : vector<64x128xf32>
    %c0_6 = arith.constant 0 : index
    %c0_7 = arith.constant 0 : index
    %17 = vector.load %arg6[%c0_6, %c0_7] : memref<64x128xf32, #tpu.memory_space<vmem>>, vector<64x128xf32>
    %18 = arith.addf %17, %15 : vector<64x128xf32>
    %c0_8 = arith.constant 0 : index
    %c0_9 = arith.constant 0 : index
    %19 = vector.load %arg6[%c0_8, %c0_9] : memref<64x128xf32, #tpu.memory_space<vmem>>, vector<64x128xf32>
    tpu.vector_store %arg6[%c0_8, %c0_9], %18 {strides = array<i32>} : memref<64x128xf32, #tpu.memory_space<vmem>>, vector<64x128xf32>,
    %c0_10 = arith.constant 0 : index
    %c0_11 = arith.constant 0 : index
    %20 = vector.load %arg7[%c0_10, %c0_11] : memref<64x128xf32, #tpu.memory_space<vmem>>, vector<64x128xf32>
    %21 = arith.maximumf %20, %16 : vector<64x128xf32>
    %c0_12 = arith.constant 0 : index
    %c0_13 = arith.constant 0 : index
    %22 = vector.load %arg7[%c0_12, %c0_13] : memref<64x128xf32, #tpu.memory_space<vmem>>, vector<64x128xf32>
    tpu.vector_store %arg7[%c0_12, %c0_13], %21 {strides = array<i32>} : memref<64x128xf32, #tpu.memory_space<vmem>>, vector<64x128xf32>,
    %c0_i32_14 = arith.constant 0 : i32
    %23 = arith.cmpi eq, %arg1, %c0_i32_14 : i32
    %24 = arith.extui %23 : i1 to i32
    %c0_i32_15 = arith.constant 0 : i32
    %25 = arith.cmpi ne, %24, %c0_i32_15 : i32
    scf.if %25 {
      %c0_16 = arith.constant 0 : index
      %c0_17 = arith.constant 0 : index
      %26 = vector.load %arg6[%c0_16, %c0_17] : memref<64x128xf32, #tpu.memory_space<vmem>>, vector<64x128xf32>
      %27 = tpu.transpose %26, [1, 0] : vector<64x128xf32> -> vector<128x64xf32>
      %cst_18 = arith.constant dense<0.000000e+00> : vector<64xf32>
      %28 = vector.multi_reduction <add>, %27, %cst_18 [0] : vector<128x64xf32> to vector<64xf32>
      %29 = vector.shape_cast %28 : vector<64xf32> to vector<1x64xf32>
      %cst_19 = arith.constant 3.906250e-03 : f32
      %30 = vector.broadcast %cst_19 : f32 to vector<1x64xf32>
      %31 = arith.mulf %29, %30 : vector<1x64xf32>
      %c0_20 = arith.constant 0 : index
      %c0_21 = arith.constant 0 : index
      %32 = vector.load %arg7[%c0_20, %c0_21] : memref<64x128xf32, #tpu.memory_space<vmem>>, vector<64x128xf32>
      %33 = tpu.transpose %32, [1, 0] : vector<64x128xf32> -> vector<128x64xf32>
      %cst_22 = arith.constant dense<0xFF800000> : vector<64xf32>
      %34 = vector.multi_reduction <maximumf>, %33, %cst_22 [0] : vector<128x64xf32> to vector<64xf32>
      %35 = vector.shape_cast %34 : vector<64xf32> to vector<1x64xf32>
      %c0_23 = arith.constant 0 : index
      %c0_24 = arith.constant 0 : index
      %36 = vector.load %arg3[%c0_23, %c0_24] : memref<64x4xf32, #tpu.memory_space<vmem>>, vector<64x4xf32>
      %cst_25 = arith.constant dense<0.000000e+00> : vector<1x4xf32>
      %37 = tpu.matmul %31, %36, %cst_25 {dimension_numbers = #tpu.dot_dimension_numbers<[1], [0], [0], [1], [0, 0, 1, 1], [], []>} : vector<1x64xf32>, vector<64x4xf32>, vector<1x4xf32> -> vector<1x4xf32>
      %cst_26 = arith.constant 0.000000e+00 : f32
      %38 = vector.broadcast %cst_26 : f32 to vector<1x4xf32>
      %39 = arith.maximumf %37, %38 : vector<1x4xf32>
      %cst_27 = arith.constant dense<0.000000e+00> : vector<1x4xf32>
      %40 = tpu.matmul %35, %36, %cst_27 {dimension_numbers = #tpu.dot_dimension_numbers<[1], [0], [0], [1], [0, 0, 1, 1], [], []>} : vector<1x64xf32>, vector<64x4xf32>, vector<1x4xf32> -> vector<1x4xf32>
      %cst_28 = arith.constant 0.000000e+00 : f32
      %41 = vector.broadcast %cst_28 : f32 to vector<1x4xf32>
      %42 = arith.maximumf %40, %41 : vector<1x4xf32>
      %43 = arith.addf %39, %42 : vector<1x4xf32>
      %c0_29 = arith.constant 0 : index
      %c0_30 = arith.constant 0 : index
      %44 = vector.load %arg4[%c0_29, %c0_30] : memref<4x64xf32, #tpu.memory_space<vmem>>, vector<4x64xf32>
      %cst_31 = arith.constant dense<0.000000e+00> : vector<1x64xf32>
      %45 = tpu.matmul %43, %44, %cst_31 {dimension_numbers = #tpu.dot_dimension_numbers<[1], [0], [0], [1], [0, 0, 1, 1], [], []>} : vector<1x4xf32>, vector<4x64xf32>, vector<1x64xf32> -> vector<1x64xf32>
      %46 = arith.negf %45 : vector<1x64xf32>
      %47 = math.exp %46 : vector<1x64xf32>
      %cst_32 = arith.constant 1.000000e+00 : f32
      %48 = vector.broadcast %cst_32 : f32 to vector<1x64xf32>
      %49 = arith.addf %48, %47 : vector<1x64xf32>
      %50 = arith.divf %48, %49 : vector<1x64xf32>
      %c0_33 = arith.constant 0 : index
      %c0_34 = arith.constant 0 : index
      %c0_35 = arith.constant 0 : index
      %51 = vector.load %arg5[%c0_33, %c0_34, %c0_35] : memref<1x1x64xf32, #tpu.memory_space<vmem>>, vector<1x1x64xf32>
      %52 = vector.shape_cast %51 : vector<1x1x64xf32> to vector<1x64xf32>
      %53 = vector.shape_cast %50 : vector<1x64xf32> to vector<1x1x64xf32>
      tpu.vector_store %arg5[%c0_33, %c0_34, %c0_35], %53 {strides = array<i32>} : memref<1x1x64xf32, #tpu.memory_space<vmem>>, vector<1x1x64xf32>,
    } else {
    }
    return
  }
  func.func @transform_0(%arg0: i32, %arg1: i32) -> (i32, i32, i32) {
    %c0_i32 = arith.constant 0 : i32
    %c0_i32_0 = arith.constant 0 : i32
    return %arg0, %c0_i32, %arg1 : i32, i32, i32
  }
  func.func @transform_1(%arg0: i32, %arg1: i32) -> (i32, i32) {
    %c0_i32 = arith.constant 0 : i32
    %c0_i32_0 = arith.constant 0 : i32
    %c0_i32_1 = arith.constant 0 : i32
    return %c0_i32, %c0_i32_0 : i32, i32
  }
  func.func @transform_2(%arg0: i32, %arg1: i32) -> (i32, i32) {
    %c0_i32 = arith.constant 0 : i32
    %c0_i32_0 = arith.constant 0 : i32
    %c0_i32_1 = arith.constant 0 : i32
    return %c0_i32, %c0_i32_0 : i32, i32
  }
  func.func @transform_3(%arg0: i32, %arg1: i32) -> (i32, i32, i32) {
    %c0_i32 = arith.constant 0 : i32
    %c0_i32_0 = arith.constant 0 : i32
    %c0_i32_1 = arith.constant 0 : i32
    return %arg0, %c0_i32, %c0_i32_0 : i32, i32, i32
  }
}

</mosaic_0001>

<bundles_post_ra>
// kernel: tpu_custom_call.1
= control target key start
LH: loop header
LB: loop body
LE: loop exit
PB: predicated region body
PF: predicated region fallthrough
CT: control target
= control target key end

     0   :  { %8 = vsyncpa [#allocation5], 0  ;;  %s1392_s0 = inlined_call_operand.hbm [shape: f32[2,64,256], index: 0, kind: input, shape index: {}]   ;;  %s1393_s1 = inlined_call_operand.vmem [shape: f32[64,4], index: 1, kind: input, shape index: {}]   ;;  %s1394_s2 = inlined_call_operand.vmem [shape: f32[4,64], index: 2, kind: input, shape index: {}]   ;;  %s1395_s3 = inlined_call_operand.hbm [shape: f32[2,1,64], index: 3, kind: output, shape index: {}]  }
   0x1   :  { %10 = vsyncpa [#allocation5 + $0x1], 0 }
   0x2   :  { %11 = vsyncpa [#allocation6], 0 }
   0x3   :  { %13 = vsyncpa [#allocation6 + $0x1], 0  ;;  %s1132_s12 = smov 0   ;;  %s1134_s13 = smov 0  }
   0x4   :  { %s1136_s14 = smov 0   ;;  %s1138_s15 = smov 0  }
   0x5   :  { %s1140_s16 = smov 0   ;;  %s1142_s17 = smov 0  }
   0x6 LB: > { %s807_s18 = sadd.s32 4294967295, %s1103_s17   ;;  %s808_s19 = sadd.s32 4294967294, %s1103_s17   ;;  %s1103_s17 = sphi %s1142_s17, %s19_s17   ;;  %s1099_s16 = sphi %s1140_s16, %s1410_s16   ;;  %s1095_s15 = sphi %s1138_s15, %s1409_s15   ;;  %s1091_s14 = sphi %s1136_s14, %s1408_s14   ;;  %s1087_s13 = sphi %s1134_s13, %s1407_s13   ;;  %s1083_s12 = sphi %s1132_s12, %s1406_s12  }
   0x7   : > { %s31_s20 = sadd.s32 1, %s1099_s16  ;;  %s40_s21 = sadd.s32 1, %s1091_s14 }
   0x8   : > { %p33_p0 = scmp.ge.s32.totalorder %s31_s20, 2  ;;  %p47_p1 = scmp.ne.s32.totalorder %s1091_s14, %s1087_s13 }
   0x9   : > { %p48_p2 = scmp.eq.s32.totalorder %s1103_s17, 0  ;;  %p53_p3 = scmp.ne.s32.totalorder %s1087_s13, %s1083_s12 }
   0xa   : > { %s1412_s20 = smov (%p33_p0, %s31_s20), 0  ;;  %p54_p5 = scmp.eq.s32.totalorder %s807_s18, 0 }
   0xb   : > { %p1173_p4 = por %p48_p2, %p47_p1  ;;  %s35_s23 = ssub.s32 %s1099_s16, %s1412_s20 }
   0xc   : > { %p119_p6 = scmp.eq.s32.totalorder %s807_s18, 1  ;;  %p38_p7 = scmp.eq.s32.totalorder %s35_s23, 0 }
   0xd   : > { %p1179_p8 = por %p54_p5, %p53_p3  ;;  %p125_p10 = scmp.eq.s32.totalorder %s808_s19, 1 }
   0xe   : > { %p1183_p9 = por %p119_p6, %p47_p1  ;;  %p932_p13 = scmp.lt.s32.totalorder %s1103_s17, 2 }
   0xf   : > { %s1188_s26 = scalar_select %p38_p7, %s1091_s14, %s40_s21  }
  0x10   : > { %s1399_s25 = scalar_select %p1183_p9, 1, 0 }
  0x11   : > { %p1190_p11 = por %p125_p10, %p53_p3  ;;  %s151_s28 = sand.u32 1, %s1091_s14  }
  0x12   : > { %s811_s29 = sshll.u32 %s151_s28, 7  ;;  %s832_s30 = sshll.u32 %s1099_s16, 11 }
  0x13   : > { %s1400_s27 = scalar_select %p1190_p11, 1, 0 }
  0x14   : > { %s1201_s6 = scalar_lea.hbm %s1392_s0, %s832_s30  ;;  %s155_s7 = scalar_lea.vmem [#allocation4], %s811_s29 }
  0x15   : > { %s164_s8 = sshll.u32 %s155_s7, 4  ;;  %p1207_p0 = pnand %p932_p13, %p1173_p4  ;;  %s1203_s8 = int_to_ptr.vmem [resolvable:$true] %s164_s8 }
  0x16   : > { %s1212_s10 = scalar_lea.sflag [#allocation5], %s151_s28  ;;  %s991_s11 = scalar_lea.hbm %s1201_s6, 2048 }
  0x17   : > { %p992_p2 = scmp.ne.s32.totalorder %s1201_s6, %s991_s11  ;;  %p993_p3 = pneg %p1207_p0 }
  0x18   : > { %s996_s21 = scalar_lea.hbm %s1392_s0, 4096  ;;  %p997_p4 = scmp.lt.u32.totalorder %s1201_s6, %s1392_s0 }
  0x19   : > { %p994_p5 = pnand %p993_p3, %p992_p2  ;;  %p998_p7 = scmp.lt.u32.totalorder %s996_s21, %s991_s11 }
  0x1a   : > { %p1000_p13 = scmp.lt.u32.totalorder %s991_s11, %s1201_s6 }
  0x1b   : > { %p995_p6 = pneg %p994_p5  ;;  %p999_p10 = por %p998_p7, %p997_p4 }
  0x1d   : > { %p1001_p12 = por %p1000_p13, %p999_p10 }
  0x1f   : > { %p1002_p1 = pnand %p1001_p12, %p995_p6 }
  0x21   : > { %1005 = shalt.err (!%p1002_p1)
}
  0x22   : > { %s1006_s28 = scalar_lea.vmem %s1203_s8, 2048  ;;  %s1105_s29 = smov [#allocation4]  }
  0x23   : > { %p1007_p2 = scmp.ne.s32.totalorder %s1203_s8, %s1006_s28  ;;  %s1011_s30 = sshll.u32 %s1105_s29, 4  ;;  %s1012_s30 = int_to_ptr.vmem [resolvable:$false] %s1011_s30 }
  0x24   : > { %s1013_s4 = scalar_lea.vmem %s1012_s30, 4096  ;;  %p1014_p9 = scmp.lt.s32.totalorder %s1203_s8, %s1012_s30 }
  0x25   : > { %p1009_p5 = pnand %p1007_p2, %p993_p3  ;;  %p1015_p4 = scmp.lt.s32.totalorder %s1013_s4, %s1006_s28 }
  0x27   : > { %p1010_p11 = pneg %p1009_p5  ;;  %p1016_p7 = por %p1015_p4, %p1014_p9 }
  0x29   : > { %p1017_p10 = pnand %p1016_p7, %p1010_p11 }
  0x2b   : > { %1020 = shalt.err (!%p1017_p10)
}
  0x2c   : > { %s1106_s5 = smov 256   ;;  %s1107_s7 = smov 16  }
  0x2d   : > { %927 = dma.hbm_to_vmem [thread:$0]  (!%p1207_p0), %s1201_s6, 2048, %s1203_s8, %s1212_s10, %s1106_s5, %s1106_s5, %s1107_s7  }
  0x2e   : > { %p172_p12 = scmp.lt.s32.totalorder %s1103_s17, 3  ;;  %p1402_p1 = scmp.ge.s32.totalorder %s1103_s17, 1 }
  0x30   : > { %p173_p3 = pnand %p1402_p1, %p172_p12 }
  0x31   : > { %s1244_s11 = sand.u32 (!%p173_p3), 1, %s1087_s13  }
  0x32   : > { %176 = sbr.rel (%p173_p3) target bundleno = 737 (0x2e1), region = 32  ;;  %s815_s18 = sshll.u32 (!%p173_p3), %s1244_s11, 7 }
  0x33   : > { %s179_s19 = scalar_lea.sflag (!%p173_p3), [#allocation5], %s1244_s11  ;;  %s1248_s21 = scalar_lea.vmem (!%p173_p3), [#allocation4], %s815_s18 }
  0x39   : > { %1074 = dma.done.wait (%p1179_p8), %s179_s19, 2048  }
  0x3a   : > { %1076 = vsyncadd (%p1179_p8), %s179_s19, 4294965248  ;;  %v225_v0 = vld [vmem:[%s1248_s21] sm:$0xff]  ;;  %v816_v1 = vld [vmem:[%s1248_s21 + $0x8] sm:$0xff]  ;;  %v1108_v35 = vmov 0.0|0.0   ;;  %vm1109_vm0 = vmmov 0   ;;  %v1110_v45 = vmov 0.0  }
  0x3b   : > { %v226_v2 = vld [vmem:[%s1248_s21 + $0x10] sm:$0xff]  ;;  %v250_v3 = vmax.f32 %v225_v0, %v816_v1  ;;  %v242_v4 = vadd.f32 %v816_v1, %v225_v0  ;;  %v817_v5 = vld [vmem:[%s1248_s21 + $0x18] sm:$0xff]  ;;  %v227_v8 = vld [vmem:[%s1248_s21 + $0x20] sm:$0xff]  ;;  %896 = vmatprep.subr.bf16.mxu0 %v1108_v35  ;;  %908 = vmatprep.subr.bf16.mxu1 %v1108_v35  ;;  %vm357_vm1 = vcmask 523264   ;;  %vm635_vm2 = vcmask 1043456   ;;  %s829_s8 = sshll.u32 %s1095_s15, 4 }
  0x3c   : > { %v251_v6 = vmax.f32 %v226_v2, %v817_v5  ;;  %v243_v7 = vadd.f32 %v817_v5, %v226_v2  ;;  %v818_v9 = vld [vmem:[%s1248_s21 + $0x28] sm:$0xff]  ;;  %v228_v12 = vld [vmem:[%s1248_s21 + $0x30] sm:$0xff]  ;;  %v819_v13 = vld [vmem:[%s1248_s21 + $0x38] sm:$0xff]  ;;  %869 = vmatprep.mubr.msk.f32.mxu0 %vm1109_vm0, %v1110_v45  ;;  %888 = vmatprep.mubr.msk.f32.mxu1 %vm1109_vm0, %v1110_v45  ;;  %vm631_vm3 = vcmask 31744   ;;  %s203_s9 = scalar_lea.vmem [#allocation7], %s1244_s11  ;;  %vm715_vm4 = vcmask 516096   ;;  %s1343_s28 = scalar_lea.hbm %s1395_s3, %s829_s8 }
  0x3d   : > { %404 = vxpose.xlu0.b32.start [1/8] (short) %v250_v3, 128  ;;  %325 = vxpose.xlu1.b32.start [1/8] (short) %v242_v4, 128  ;;  %v252_v10 = vmax.f32 %v227_v8, %v818_v9  ;;  %v244_v11 = vadd.f32 %v818_v9, %v227_v8  ;;  %v253_v14 = vmax.f32 %v228_v12, %v819_v13  ;;  %v229_v16 = vld [vmem:[%s1248_s21 + $0x40] sm:$0xff]  ;;  %v820_v17 = vld [vmem:[%s1248_s21 + $0x48] sm:$0xff]  ;;  %v230_v20 = vld [vmem:[%s1248_s21 + $0x50] sm:$0xff]  ;;  %s730_s10 = sshll.u32 %s203_s9, 4  ;;  %s718_s29 = scalar_lea.sflag [#allocation6], %s1244_s11  ;;  %s1345_s10 = int_to_ptr.vmem [resolvable:$true] %s730_s10 }
  0x3e   : > { %v245_v15 = vadd.f32 %v819_v13, %v228_v12  ;;  %v254_v18 = vmax.f32 %v229_v16, %v820_v17  ;;  %v246_v19 = vadd.f32 %v820_v17, %v229_v16  ;;  %v821_v21 = vld [vmem:[%s1248_s21 + $0x58] sm:$0xff]  ;;  %v231_v24 = vld [vmem:[%s1248_s21 + $0x60] sm:$0xff]  ;;  %v822_v25 = vld [vmem:[%s1248_s21 + $0x68] sm:$0xff]  ;;  %s1021_s30 = scalar_lea.vmem %s1345_s10, 16  ;;  %p1403_p9 = scmp.ne.s32.totalorder %s1399_s25, 0 }
  0x3f   : > { %v255_v22 = vmax.f32 %v230_v20, %v821_v21  ;;  %v247_v23 = vadd.f32 %v821_v21, %v230_v20  ;;  %v256_v26 = vmax.f32 %v231_v24, %v822_v25  ;;  %v248_v27 = vadd.f32 %v822_v25, %v231_v24  ;;  %v232_v28 = vld [vmem:[%s1248_s21 + $0x70] sm:$0xff]  ;;  %v823_v29 = vld [vmem:[%s1248_s21 + $0x78] sm:$0xff]  ;;  %v473_v32 = vld [vmem:[%s1393_s1] sm:$0xff]  ;;  %p1022_p8 = scmp.ne.s32.totalorder %s1345_s10, %s1021_s30  ;;  %s1111_s15 = smov [#allocation7]  }
  0x40   : > { %v257_v30 = vmax.f32 %v232_v28, %v823_v29  ;;  %v249_v31 = vadd.f32 %v823_v29, %v232_v28  ;;  %v474_v33 = vld [vmem:[%s1393_s1 + $0x8] sm:$0xff]  ;;  %v475_v36 = vld [vmem:[%s1393_s1 + $0x10] sm:$0xff]  ;;  %v476_v37 = vld [vmem:[%s1393_s1 + $0x18] sm:$0xff]  ;;  %s1025_s4 = sshll.u32 %s1111_s15, 4  ;;  %s1026_s4 = int_to_ptr.vmem [resolvable:$false] %s1025_s4 }
  0x41   : > { %405 = vxpose.xlu0.b32.cont [2/8] (short) %v251_v6, 128  ;;  %326 = vxpose.xlu1.b32.cont [2/8] (short) %v243_v7, 128  ;;  %v897_v34 = vpack.c.bf16 %v474_v33, %v473_v32  ;;  %v900_v38 = vpack.c.bf16 %v476_v37, %v475_v36  ;;  %v477_v39 = vld [vmem:[%s1393_s1 + $0x20] sm:$0xff]  ;;  %v478_v40 = vld [vmem:[%s1393_s1 + $0x28] sm:$0xff]  ;;  %v479_v42 = vld [vmem:[%s1393_s1 + $0x30] sm:$0xff]  ;;  %p1023_p11 = pnand %p1022_p8, %p1403_p9  ;;  %s1027_s5 = scalar_lea.vmem %s1026_s4, 32 }
  0x42   : > { %v903_v41 = vpack.c.bf16 %v478_v40, %v477_v39  ;;  %v480_v43 = vld [vmem:[%s1393_s1 + $0x38] sm:$0xff]  ;;  %p1028_p6 = scmp.lt.s32.totalorder %s1345_s10, %s1026_s4  ;;  %p1029_p13 = scmp.lt.s32.totalorder %s1027_s5, %s1021_s30 }
  0x43   : > { %898 = vmatpush3.bf16.msra.mxu0 %v897_v34  ;;  %910 = vmatpush3.bf16.msra.mxu1 %v897_v34  ;;  %v906_v44 = vpack.c.bf16 %v480_v43, %v479_v42  ;;  %p1024_p0 = pneg %p1023_p11 }
  0x44   : > { %899 = vmatprep.subr.bf16.mxu0 %v1108_v35  ;;  %911 = vmatprep.subr.bf16.mxu1 %v1108_v35  ;;  %p1030_p2 = por %p1029_p13, %p1028_p6 }
  0x45   : > { %406 = vxpose.xlu0.b32.cont [3/8] (short) %v252_v10, 128  ;;  %327 = vxpose.xlu1.b32.cont [3/8] (short) %v244_v11, 128 }
  0x46   : > { %p1031_p5 = pnand %p1030_p2, %p1024_p0 }
  0x47   : > { %901 = vmatpush3.bf16.msra.mxu0 %v900_v38  ;;  %913 = vmatpush3.bf16.msra.mxu1 %v900_v38 }
  0x48   : > { %902 = vmatprep.subr.bf16.mxu0 %v1108_v35  ;;  %914 = vmatprep.subr.bf16.mxu1 %v1108_v35 }
  0x49   : > { %407 = vxpose.xlu0.b32.cont [4/8] (short) %v253_v14, 128  ;;  %328 = vxpose.xlu1.b32.cont [4/8] (short) %v245_v15, 128 }
  0x4b   : > { %904 = vmatpush3.bf16.msra.mxu0 %v903_v41  ;;  %916 = vmatpush3.bf16.msra.mxu1 %v903_v41 }
  0x4c   : > { %905 = vmatprep.subr.bf16.mxu0 %v1108_v35  ;;  %917 = vmatprep.subr.bf16.mxu1 %v1108_v35 }
  0x4d   : > { %408 = vxpose.xlu0.b32.cont [5/8] (short) %v254_v18, 128  ;;  %329 = vxpose.xlu1.b32.cont [5/8] (short) %v246_v19, 128 }
  0x4f   : > { %907 = vmatpush3.bf16.msra.mxu0 %v906_v44  ;;  %919 = vmatpush3.bf16.msra.mxu1 %v906_v44 }
  0x50   : > { %891 = vmatprep.subr.mxu0 %v1110_v45 }
  0x51   : > { %409 = vxpose.xlu0.b32.cont [6/8] (short) %v255_v22, 128  ;;  %330 = vxpose.xlu1.b32.cont [6/8] (short) %v247_v23, 128 }
  0x55   : > { %410 = vxpose.xlu0.b32.cont [7/8] (short) %v256_v26, 128  ;;  %331 = vxpose.xlu1.b32.cont [7/8] (short) %v248_v27, 128 }
  0x59   : > { %411 = vxpose.xlu0.b32.end [8/8] (short) %v257_v30, 128  ;;  %332 = vxpose.xlu1.b32.end [8/8] (short) %v249_v31, 128 }
  0xbd   : > { %v420_v46 = vpop.trf.xlu0  ;;  %v341_v47 = vpop.trf.xlu1 }
  0xbe   : > { %v358_v1 = vsel %vm357_vm1, %v341_v47, 0.0  ;;  %v436_v32 = vsel %vm357_vm1, %v420_v46, -inf }
  0xc1   : > { %v421_v48 = vpop.trf.xlu0  ;;  %v342_v49 = vpop.trf.xlu1 }
  0xc2   : > { %v359_v62 = vsel %vm357_vm1, %v342_v49, 0.0  ;;  %v437_v36 = vsel %vm357_vm1, %v421_v48, -inf }
  0xc3   : > { %v360_v3 = vadd.f32 %v359_v62, %v358_v1 }
  0xc5   : > { %v422_v50 = vpop.trf.xlu0  ;;  %v343_v51 = vpop.trf.xlu1 }
  0xc6   : > { %v361_v2 = vsel %vm357_vm1, %v343_v51, 0.0  ;;  %v438_v37 = vsel %vm357_vm1, %v422_v50, -inf }
  0xc7   : > { %v362_v5 = vadd.f32 %v361_v2, %v360_v3 }
  0xc9   : > { %v423_v52 = vpop.trf.xlu0  ;;  %v344_v53 = vpop.trf.xlu1 }
  0xca   : > { %v363_v4 = vsel %vm357_vm1, %v344_v53, 0.0  ;;  %v439_v38 = vsel %vm357_vm1, %v423_v52, -inf }
  0xcb   : > { %v364_v9 = vadd.f32 %v363_v4, %v362_v5 }
  0xcd   : > { %v424_v54 = vpop.trf.xlu0  ;;  %v345_v55 = vpop.trf.xlu1 }
  0xce   : > { %v365_v8 = vsel %vm357_vm1, %v345_v55, 0.0  ;;  %v440_v33 = vsel %vm357_vm1, %v424_v54, -inf }
  0xcf   : > { %v366_v11 = vadd.f32 %v365_v8, %v364_v9  ;;  %v441_v44 = vmax.f32 %v436_v32, %v440_v33 }
  0xd1   : > { %v425_v56 = vpop.trf.xlu0  ;;  %v346_v57 = vpop.trf.xlu1 }
  0xd2   : > { %v367_v10 = vsel %vm357_vm1, %v346_v57, 0.0  ;;  %v442_v34 = vsel %vm357_vm1, %v425_v56, -inf }
  0xd3   : > { %v368_v15 = vadd.f32 %v367_v10, %v366_v11  ;;  %v443_v46 = vmax.f32 %v437_v36, %v442_v34 }
  0xd5   : > { %v426_v58 = vpop.trf.xlu0  ;;  %v347_v59 = vpop.trf.xlu1 }
  0xd6   : > { %v369_v14 = vsel %vm357_vm1, %v347_v59, 0.0  ;;  %v444_v40 = vsel %vm357_vm1, %v426_v58, -inf }
  0xd7   : > { %v370_v17 = vadd.f32 %v369_v14, %v368_v15  ;;  %v445_v55 = vmax.f32 %v438_v37, %v444_v40 }
  0xd9   : > { %v427_v60 = vpop.trf.xlu0  ;;  %v348_v61 = vpop.trf.xlu1 }
  0xda   : > { %v371_v16 = vsel %vm357_vm1, %v348_v61, 0.0  ;;  %v446_v41 = vsel %vm357_vm1, %v427_v60, -inf }
  0xdb   : > { %v372_v21 = vadd.f32 %v371_v16, %v370_v17  ;;  %v447_v56 = vmax.f32 %v439_v38, %v446_v41 }
  0xdd   : > { %v428_v63 = vpop.trf.xlu0  ;;  %v349_v0 = vpop.trf.xlu1 }
  0xde   : > { %v373_v20 = vsel %vm357_vm1, %v349_v0, 0.0  ;;  %v448_v47 = vsel %vm357_vm1, %v428_v63, -inf }
  0xdf   : > { %v374_v23 = vadd.f32 %v373_v20, %v372_v21  ;;  %v449_v59 = vmax.f32 %v441_v44, %v448_v47 }
  0xe1   : > { %v429_v6 = vpop.trf.xlu0  ;;  %v350_v7 = vpop.trf.xlu1 }
  0xe2   : > { %v375_v22 = vsel %vm357_vm1, %v350_v7, 0.0  ;;  %v450_v42 = vsel %vm357_vm1, %v429_v6, -inf }
  0xe3   : > { %v376_v27 = vadd.f32 %v375_v22, %v374_v23  ;;  %v451_v57 = vmax.f32 %v443_v46, %v450_v42 }
  0xe5   : > { %v430_v12 = vpop.trf.xlu0  ;;  %v351_v13 = vpop.trf.xlu1 }
  0xe6   : > { %v377_v26 = vsel %vm357_vm1, %v351_v13, 0.0  ;;  %v452_v50 = vsel %vm357_vm1, %v430_v12, -inf }
  0xe7   : > { %v378_v29 = vadd.f32 %v377_v26, %v376_v27  ;;  %v453_v62 = vmax.f32 %v445_v55, %v452_v50  ;;  %v630_v26 = vld [vmem:[%s1394_s2] sm:$0xf] }
  0xe9   : > { %v431_v18 = vpop.trf.xlu0  ;;  %v352_v19 = vpop.trf.xlu1 }
  0xea   : > { %v379_v28 = vsel %vm357_vm1, %v352_v19, 0.0  ;;  %v454_v52 = vsel %vm357_vm1, %v431_v18, -inf }
  0xeb   : > { %v380_v39 = vadd.f32 %v379_v28, %v378_v29  ;;  %v455_v63 = vmax.f32 %v447_v56, %v454_v52 }
  0xed   : > { %v432_v24 = vpop.trf.xlu0  ;;  %v353_v25 = vpop.trf.xlu1 }
  0xee   : > { %v381_v35 = vsel %vm357_vm1, %v353_v25, 0.0  ;;  %v456_v60 = vsel %vm357_vm1, %v432_v24, -inf }
  0xef   : > { %v382_v49 = vadd.f32 %v381_v35, %v380_v39  ;;  %v457_v6 = vmax.f32 %v449_v59, %v456_v60 }
  0xf1   : > { %v433_v30 = vpop.trf.xlu0  ;;  %v354_v31 = vpop.trf.xlu1 }
  0xf2   : > { %v383_v43 = vsel %vm357_vm1, %v354_v31, 0.0  ;;  %v458_v53 = vsel %vm357_vm1, %v433_v30, -inf }
  0xf3   : > { %v384_v58 = vadd.f32 %v383_v43, %v382_v49  ;;  %v459_v0 = vmax.f32 %v451_v57, %v458_v53 }
  0xf5   : > { %v434_v51 = vpop.trf.xlu0  ;;  %v355_v48 = vpop.trf.xlu1  ;;  %v464_v10 = vmax.f32 %v457_v6, %v459_v0 }
  0xf6   : > { %v385_v54 = vsel %vm357_vm1, %v355_v48, 0.0  ;;  %v460_v61 = vsel %vm357_vm1, %v434_v51, -inf }
  0xf7   : > { %v386_v1 = vadd.f32 %v385_v54, %v384_v58  ;;  %v461_v7 = vmax.f32 %v453_v62, %v460_v61 }
  0xf9   : > { %v435_v2 = vpop.trf.xlu0  ;;  %v356_v3 = vpop.trf.xlu1 }
  0xfa   : > { %v462_v4 = vsel %vm357_vm1, %v435_v2, -inf  ;;  %v387_v5 = vsel %vm357_vm1, %v356_v3, 0.0 }
  0xfb   : > { %v463_v8 = vmax.f32 %v455_v63, %v462_v4  ;;  %v388_v9 = vadd.f32 %v387_v5, %v386_v1 }
  0xfd   : > { %v465_v11 = vmax.f32 %v461_v7, %v463_v8  ;;  %v389_v12 = vrot.slane %v388_v9, 4 }
  0xff   : > { %v466_v13 = vmax.f32 %v464_v10, %v465_v11  ;;  %v390_v14 = vadd.f32 %v389_v12, %v388_v9 }
 0x101   : > { %v467_v15 = vrot.slane %v466_v13, 4  ;;  %v391_v16 = vrot.slane %v390_v14, 2 }
 0x103   : > { %v468_v17 = vmax.f32 %v466_v13, %v467_v15  ;;  %v392_v18 = vadd.f32 %v391_v16, %v390_v14 }
 0x105   : > { %v469_v19 = vrot.slane %v468_v17, 2  ;;  %v393_v20 = vrot.slane %v392_v18, 1 }
 0x107   : > { %v394_v21 = vadd.f32 %v393_v20, %v392_v18  ;;  %v470_v22 = vmax.f32 %v468_v17, %v469_v19 }
 0x109   : > { %v395_v23 = vmul.f32 0.00390625, %v394_v21  ;;  %v471_v24 = vrot.slane %v470_v22, 1 }
 0x10b   : > { %870 = vmatmul.mubr.msk.f32.vlgmr.msra.gmra.mrb[0].mxu0 %vm357_vm1, %v395_v23  ;;  %v472_v25 = vmax.f32 %v470_v22, %v471_v24 }
 0x10c   : > { %893 = vmatprep.mubr.msk.f32.mxu0 %vm1109_vm0, %v1110_v45  ;;  %892 = vmatpush3.msk.msra.mxu0 %vm635_vm2, %v630_v26 }
 0x10d   : > { %889 = vmatmul.mubr.msk.f32.vlgmr.msra.gmra.mrb[0].mxu1 %vm357_vm1, %v472_v25 }
 0x1de   : > { %v550_v27 = vpop.f32.mrb[0].mxu0 }
 0x1df   : > { %v871_v28 = vpop.f32.mrb[1].mxu0  ;;  %v554_v30 = vmax.f32 %v550_v27, 0.0 }
 0x1e0   : > { %v624_v29 = vpop.f32.mrb[0].mxu1 }
 0x1e1   : > { %v628_v31 = vmax.f32 %v624_v29, 0.0  ;;  %v890_v32 = vpop.f32.mrb[1].mxu1 }
 0x1e3   : > { %v629_v33 = vadd.f32 %v628_v31, %v554_v30 }
 0x1e5   : > { %894 = vmatmul.mubr.msk.f32.vlgmr.msra.gmra.mrb[2].mxu0 %vm631_vm3, %v629_v33 }
 0x2b8   : > { %v705_v45 = vpop.f32.mrb[2].mxu0 }
 0x2b9   : > { %v828_v34 = vmul.f32 -1.442695, %v705_v45  ;;  %v895_v35 = vpop.f32.mrb[3].mxu0 }
 0x2bb   : > { %987 = vpow2.f32 %v828_v34 }
 0x2c5   : > { %v988_v36 = vpop.eup %987 }
 0x2c6   : > { %v712_v37 = vadd.f32 1.0, %v988_v36 }
 0x2c8   : > { %989 = vrcp.f32 %v712_v37 }
 0x2d2   : > { %v990_v38 = vpop.eup %989 }
 0x2d3   : > { %716 = vst.msk [vmem:[%s203_s9] sm:$0x1] %vm715_vm4, %v990_v38 }
 0x2d4   : > { %1034 = shalt.err (!%p1031_p5)
}
 0x2d5   : > { %s1035_s11 = scalar_lea.hbm %s1343_s28, 16  ;;  %s1039_s19 = scalar_lea.hbm %s1395_s3, 32 }
 0x2d6   : > { %p1036_p4 = scmp.ne.s32.totalorder %s1343_s28, %s1035_s11  ;;  %p1040_p12 = scmp.lt.u32.totalorder %s1343_s28, %s1395_s3 }
 0x2d7   : > { %p1041_p1 = scmp.lt.u32.totalorder %s1039_s19, %s1035_s11  ;;  %p1043_p8 = scmp.lt.u32.totalorder %s1035_s11, %s1343_s28 }
 0x2d8   : > { %p1037_p7 = pnand %p1036_p4, %p1403_p9 }
 0x2d9   : > { %p1042_p3 = por %p1041_p1, %p1040_p12 }
 0x2da   : > { %p1038_p10 = pneg %p1037_p7 }
 0x2db   : > { %p1044_p11 = por %p1043_p8, %p1042_p3 }
 0x2dd   : > { %p1045_p0 = pnand %p1044_p11, %p1038_p10 }
 0x2df   : > { %1048 = shalt.err (!%p1045_p0)
}
 0x2e0   : > { %922 = dma.vmem_to_hbm [thread:$0]  (%p1403_p9), %s1345_s10, 16, %s1343_s28, %s718_s29  }
 0x2e1 PF: > { %s742_s6 = sand.u32 1, %s1083_s12   ;;  %p1404_p6 = scmp.ne.s32.totalorder %s1400_s27, 0 }
 0x2e2   : > { %p1405_p13 = scmp.ge.s32.totalorder %s1103_s17, 2  ;;  %s743_s8 = scalar_lea.sflag [#allocation6], %s742_s6 }
 0x2e4   : > { %p929_p2 = pnand %p1405_p13, %p1404_p6 }
 0x2e6   : > { %1078 = dma.done.wait (!%p929_p2), %s743_s8, 16  }
 0x2e7   : > { %1080 = vsyncadd (!%p929_p2), %s743_s8, 4294967280  ;;  %s19_s17 = sadd.s32 1, %s1103_s17   ;;  %s1406_s12 = smov %s1087_s13 }
 0x2e8   : > { %p16_p5 = scmp.ge.s32.totalorder %s19_s17, 4   ;;  %s1407_s13 = smov %s1091_s14 }
 0x2e9   : > { %s1408_s14 = smov %s1188_s26  ;;  %s1409_s15 = smov %s1099_s16 }
 0x2ea   : > { %s1410_s16 = smov %s1412_s20  ;;  %18 = sbr.rel (!%p16_p5) target bundleno = 6 (0x6), region = 86 }
 0x2f1   :  { %747 = vsyncpa [#allocation5], 1 }
 0x2f2   :  { %749 = vsyncpa [#allocation5 + $0x1], 1 }
 0x2f3   :  { %750 = vsyncpa [#allocation6], 1 }
 0x2f4   :  { %752 = vsyncpa [#allocation6 + $0x1], 1 }

</bundles_post_ra>
